<compile_context>
chip_gen: v7x
topology: tpu7x:2x2x1
jax: 0.10.0
libtpu: 0.0.40
codegen_flags: <defaults>
</compile_context>

<pallas_src>
import jax
import jax.numpy as jnp
from jax.experimental import pallas as pl
from jax.experimental.pallas import tpu as pltpu


def nfm_kernel(idx_ref, tabT_ref, w1T_ref, b1_ref, w2_ref, out_ref):
    """One batch tile of the fused NFM forward (eval mode).

    idx_ref  : (F, TB)    int32  global embedding-row ids (field offsets added)
    tabT_ref : (2D+1, V)  f32    fused table: rows [0:D]   = emb.T
                                              rows [D:2D]  = (emb*emb).T
                                              row  [2D]    = lin + (b2+lin_bias)/F
    w1T_ref  : (H, D)     f32    BN1/BN2-folded first Linear, transposed
    b1_ref   : (H, 1)     f32    folded bias
    w2_ref   : (H, 1)     f32    final Linear weight
    out_ref  : (1, TB)    f32    sigmoid probabilities (lane-dense store)
    """
    idx = idx_ref[...]                                    # (F, TB)
    num_fields, tb = idx.shape
    rows, vocab = tabT_ref.shape
    embed_dim = (rows - 1) // 2

    # One-hot field-count matrix, transposed: countsT[v, b] = #{f : idx[f,b]==v}.
    # Loop is over the (tiny, static) field count -> unrolled at trace time.
    row_ids = jax.lax.broadcasted_iota(jnp.int32, (vocab, tb), 0)
    countsT = jnp.zeros((vocab, tb), jnp.float32)
    for f in range(num_fields):
        countsT = countsT + (idx[f:f + 1, :] == row_ids).astype(jnp.float32)

    hp = jax.lax.Precision.HIGHEST
    # Single MXU matmul = gather + field-sum for emb, emb^2 and the wide term.
    g = jnp.dot(tabT_ref[...], countsT, precision=hp,
                preferred_element_type=jnp.float32)        # (2D+1, TB)
    sum_e = g[:embed_dim, :]                               # (D, TB)
    sum_e2 = g[embed_dim:2 * embed_dim, :]                 # (D, TB)
    lin = g[2 * embed_dim:, :]                             # (1, TB)  incl. const

    # FactorizationMachine(reduce_sum=False); BN1 folded into W1'/b1'.
    crossT = 0.5 * (sum_e * sum_e - sum_e2)                # (D, TB)

    # FeedForward: folded Linear(D,H)+BN2, then ReLU (Dropout = identity, eval).
    hT = jnp.dot(w1T_ref[...], crossT, precision=hp,
                 preferred_element_type=jnp.float32) + b1_ref[...]   # (H, TB)
    hT = jnp.maximum(hT, 0.0)

    # Final Linear(H, 1): VPU multiply + cross-sublane reduce.
    logit = jnp.sum(hT * w2_ref[...], axis=0, keepdims=True) + lin   # (1, TB)
    out_ref[...] = jax.nn.sigmoid(logit)


def fold_batchnorm(gamma, beta, running_mean, running_var, eps=1e-5):
    scale = gamma / jnp.sqrt(running_var + eps)
    bias = beta - running_mean * scale
    return scale, bias


def fold_nfm_params(emb_table, lin_table, lin_bias, bn1, w1, b1, bn2, w2, b2,
                    num_fields):
    """Trace-time algebra: fold both BatchNorms into W1/b1, build the fused
    (2D+1, V) gather table, and pre-transpose into (feature, batch) layouts."""
    s1, o1 = fold_batchnorm(*bn1)
    s2, o2 = fold_batchnorm(*bn2)
    w1f = (s1[:, None] * w1) * s2[None, :]                # (D, H)
    b1f = (o1 @ w1 + b1) * s2 + o2                        # (H,)

    # Every column of the one-hot count matrix sums to exactly F, so a global
    # scalar constant folds into the linear row as const/F per vocab entry.
    const = b2.reshape(()) + lin_bias.reshape(())
    lin_row = lin_table.reshape(1, -1) + const / float(num_fields)   # (1, V)
    fusedT = jnp.concatenate(
        [emb_table.T, (emb_table * emb_table).T, lin_row], axis=0)   # (2D+1, V)

    return dict(
        fusedT=fusedT,
        w1T=w1f.T,                                        # (H, D)
        b1_col=b1f.reshape(-1, 1),                        # (H, 1)
        w2_col=w2.reshape(-1, 1),                         # (H, 1)
    )


def nfm_forward(idx, params, *, tb=128):
    """idx: (B, F) int32 global embedding-row ids. Returns sigmoid probs (B,)."""
    B, F = idx.shape
    R, V = params["fusedT"].shape
    H, D = params["w1T"].shape

    idxT = idx.T                                          # (F, B): batch on lanes
    Bp = pl.cdiv(B, tb) * tb
    if Bp != B:
        idxT = jnp.pad(idxT, ((0, 0), (0, Bp - B)))       # pad rows discarded below

    full = lambda shape: pl.BlockSpec(shape, lambda i: (0, 0))
    param_bytes = 4 * sum(int(p.size) for p in params.values())
    cost = pl.CostEstimate(
        flops=Bp * (2 * R * V + 2 * D * H + 2 * F * V + 5 * D + 4 * H),
        transcendentals=Bp,
        bytes_accessed=int(idxT.size) * 4 + Bp * 4 + param_bytes,
    )

    out = pl.pallas_call(
        nfm_kernel,
        out_shape=jax.ShapeDtypeStruct((1, Bp), jnp.float32),
        grid=(Bp // tb,),
        in_specs=[
            pl.BlockSpec((F, tb), lambda i: (0, i)),      # ids: only streamed operand
            full((R, V)),                                 # fused emb/emb^2/lin table
            full((H, D)),                                 # folded W1 (transposed)
            full((H, 1)),                                 # folded b1
            full((H, 1)),                                 # W2
        ],
        out_specs=pl.BlockSpec((1, tb), lambda i: (0, i)),  # lane-dense output
        compiler_params=pltpu.CompilerParams(
            dimension_semantics=("parallel",),            # megacore / 2-TC sharding
        ),
        cost_estimate=cost,
    )(idxT, params["fusedT"], params["w1T"], params["b1_col"], params["w2_col"])
    return out[0, :B]


if __name__ == "__main__":
    key = jax.random.PRNGKey(0)
    ks = jax.random.split(key, 12)

    # --- synthetic config (small, consistent with the module) ---
    field_dims = (7, 11, 13, 5)        # 4 fields
    B = 256                            # two TB=128 tiles -> exercises the pipeline
    F = len(field_dims)
    D = 32                             # embed_dim
    H = 64                             # mlp_dims = [64]
    V = sum(field_dims)
    offsets = jnp.array((0,) + tuple(jnp.cumsum(jnp.array(field_dims))[:-1].tolist()),
                        dtype=jnp.int32)

    # --- deterministic synthetic parameters (no checkpoint) ---
    emb_table = 0.1 * jax.random.normal(ks[0], (V, D), jnp.float32)
    lin_table = 0.1 * jax.random.normal(ks[1], (V, 1), jnp.float32)
    lin_bias = jnp.zeros((1,), jnp.float32)

    bn1 = (1.0 + 0.05 * jax.random.normal(ks[2], (D,), jnp.float32),   # gamma
           0.05 * jax.random.normal(ks[3], (D,), jnp.float32),         # beta
           0.01 * jax.random.normal(ks[4], (D,), jnp.float32),         # running_mean
           jnp.abs(1.0 + 0.05 * jax.random.normal(ks[5], (D,), jnp.float32)))  # var

    w1 = 0.1 * jax.random.normal(ks[6], (D, H), jnp.float32)
    b1 = 0.05 * jax.random.normal(ks[7], (H,), jnp.float32)

    bn2 = (1.0 + 0.05 * jax.random.normal(ks[8], (H,), jnp.float32),
           0.05 * jax.random.normal(ks[9], (H,), jnp.float32),
           jnp.zeros((H,), jnp.float32),
           jnp.ones((H,), jnp.float32))

    w2 = 0.1 * jax.random.normal(ks[10], (H, 1), jnp.float32)
    b2 = jnp.zeros((1,), jnp.float32)

    # --- inputs: x is the LongTensor (B, F) of per-field category ids ---
    x = jnp.stack(
        [jax.random.randint(jax.random.fold_in(ks[11], i), (B,), 0, field_dims[i])
         for i in range(F)], axis=1).astype(jnp.int32)
    idx = x + offsets[None, :]                            # global row ids, (B, F)

    params = fold_nfm_params(emb_table, lin_table.reshape(-1), lin_bias,
                             bn1, w1, b1, bn2, w2, b2, num_fields=F)
    out = jax.block_until_ready(nfm_forward(idx, params, tb=128))

    # --- reference in plain JAX (same eval-mode semantics as the PyTorch module) ---
    hp = jax.lax.Precision.HIGHEST
    emb = emb_table[idx]                                  # (B, F, D)
    lin = jnp.sum(lin_table[idx], axis=1) + lin_bias[None, :]         # (B, 1)
    s1, o1 = fold_batchnorm(*bn1)
    s2, o2 = fold_batchnorm(*bn2)
    cross = 0.5 * (jnp.sum(emb, 1) ** 2 - jnp.sum(emb ** 2, 1))       # FM cross term
    h = cross * s1[None, :] + o1[None, :]                 # BatchNorm1d(embed_dim)
    h = jnp.dot(h, w1, precision=hp) + b1[None, :]        # Linear(D, H)
    h = h * s2[None, :] + o2[None, :]                     # BatchNorm1d(H)
    h = jnp.maximum(h, 0.0)                               # ReLU (Dropout = identity)
    ref = jax.nn.sigmoid(jnp.dot(h, w2, precision=hp) + b2[None, :] + lin)[:, 0]

    assert out.shape == (B,)
    max_err = float(jnp.max(jnp.abs(out - ref)))
    assert jnp.allclose(out, ref, atol=1e-4, rtol=1e-4), f"max abs err = {max_err}"

    print("KERNEL_OK")
</pallas_src>

<mosaic_0001>
module attributes {stable_mosaic.version = 11 : i64} {
  func.func @nfm_kernel(%arg0: i32, %arg1: memref<4x128xi32, #tpu.memory_space<vmem>>, %arg2: memref<65x36xf32, #tpu.memory_space<vmem>>, %arg3: memref<64x32xf32, #tpu.memory_space<vmem>>, %arg4: memref<64x1xf32, #tpu.memory_space<vmem>>, %arg5: memref<64x1xf32, #tpu.memory_space<vmem>>, %arg6: memref<1x128xf32, #tpu.memory_space<vmem>>) attributes {dimension_semantics = [#tpu.dimension_semantics<parallel>], iteration_bounds = array<i64: 2>, scalar_prefetch = 0 : i64, scratch_operands = 0 : i64, tpu.core_type = #tpu.core_type<tc>, window_params = [{transform_indices = @transform_0, window_bounds = array<i64: 4, 128>}, {pipeline_mode = #tpu.pipeline_mode<synchronous>, transform_indices = @transform_1, window_bounds = array<i64: 65, 36>}, {pipeline_mode = #tpu.pipeline_mode<synchronous>, transform_indices = @transform_2, window_bounds = array<i64: 64, 32>}, {pipeline_mode = #tpu.pipeline_mode<synchronous>, transform_indices = @transform_3, window_bounds = array<i64: 64, 1>}, {pipeline_mode = #tpu.pipeline_mode<synchronous>, transform_indices = @transform_4, window_bounds = array<i64: 64, 1>}, {transform_indices = @transform_5, window_bounds = array<i64: 1, 128>}]} {
    %c0 = arith.constant 0 : index
    %c0_0 = arith.constant 0 : index
    %0 = vector.load %arg1[%c0, %c0_0] : memref<4x128xi32, #tpu.memory_space<vmem>>, vector<4x128xi32>
    %1 = tpu.iota {dimensions = array<i32: 0>} : vector<36x128xi32>
    %cst = arith.constant 0.000000e+00 : f32
    %2 = vector.broadcast %cst : f32 to vector<36x128xf32>
    %3 = vector.extract_strided_slice %0 {offsets = [0, 0], sizes = [1, 128], strides = [1, 1]} : vector<4x128xi32> to vector<1x128xi32>
    %4 = vector.broadcast %3 : vector<1x128xi32> to vector<36x128xi32>
    %5 = arith.cmpi eq, %4, %1 : vector<36x128xi32>
    %6 = arith.extui %5 : vector<36x128xi1> to vector<36x128xi32>
    %7 = arith.sitofp %6 : vector<36x128xi32> to vector<36x128xf32>
    %8 = arith.addf %2, %7 : vector<36x128xf32>
    %9 = vector.extract_strided_slice %0 {offsets = [1, 0], sizes = [1, 128], strides = [1, 1]} : vector<4x128xi32> to vector<1x128xi32>
    %10 = vector.broadcast %9 : vector<1x128xi32> to vector<36x128xi32>
    %11 = arith.cmpi eq, %10, %1 : vector<36x128xi32>
    %12 = arith.extui %11 : vector<36x128xi1> to vector<36x128xi32>
    %13 = arith.sitofp %12 : vector<36x128xi32> to vector<36x128xf32>
    %14 = arith.addf %8, %13 : vector<36x128xf32>
    %15 = vector.extract_strided_slice %0 {offsets = [2, 0], sizes = [1, 128], strides = [1, 1]} : vector<4x128xi32> to vector<1x128xi32>
    %16 = vector.broadcast %15 : vector<1x128xi32> to vector<36x128xi32>
    %17 = arith.cmpi eq, %16, %1 : vector<36x128xi32>
    %18 = arith.extui %17 : vector<36x128xi1> to vector<36x128xi32>
    %19 = arith.sitofp %18 : vector<36x128xi32> to vector<36x128xf32>
    %20 = arith.addf %14, %19 : vector<36x128xf32>
    %21 = vector.extract_strided_slice %0 {offsets = [3, 0], sizes = [1, 128], strides = [1, 1]} : vector<4x128xi32> to vector<1x128xi32>
    %22 = vector.broadcast %21 : vector<1x128xi32> to vector<36x128xi32>
    %23 = arith.cmpi eq, %22, %1 : vector<36x128xi32>
    %24 = arith.extui %23 : vector<36x128xi1> to vector<36x128xi32>
    %25 = arith.sitofp %24 : vector<36x128xi32> to vector<36x128xf32>
    %26 = arith.addf %20, %25 : vector<36x128xf32>
    %c0_1 = arith.constant 0 : index
    %c0_2 = arith.constant 0 : index
    %27 = vector.load %arg2[%c0_1, %c0_2] : memref<65x36xf32, #tpu.memory_space<vmem>>, vector<65x36xf32>
    %cst_3 = arith.constant dense<0.000000e+00> : vector<65x128xf32>
    %28 = tpu.matmul %27, %26, %cst_3 {dimension_numbers = #tpu.dot_dimension_numbers<[1], [0], [0], [1], [0, 0, 1, 1], [], []>, precision = #tpu.contract_precision<fp32>} : vector<65x36xf32>, vector<36x128xf32>, vector<65x128xf32> -> vector<65x128xf32>
    %29 = vector.extract_strided_slice %28 {offsets = [0, 0], sizes = [32, 128], strides = [1, 1]} : vector<65x128xf32> to vector<32x128xf32>
    %30 = vector.extract_strided_slice %28 {offsets = [32, 0], sizes = [32, 128], strides = [1, 1]} : vector<65x128xf32> to vector<32x128xf32>
    %31 = vector.extract_strided_slice %28 {offsets = [64, 0], sizes = [1, 128], strides = [1, 1]} : vector<65x128xf32> to vector<1x128xf32>
    %32 = arith.mulf %29, %29 : vector<32x128xf32>
    %33 = arith.subf %32, %30 : vector<32x128xf32>
    %cst_4 = arith.constant 5.000000e-01 : f32
    %34 = vector.broadcast %cst_4 : f32 to vector<32x128xf32>
    %35 = arith.mulf %34, %33 : vector<32x128xf32>
    %c0_5 = arith.constant 0 : index
    %c0_6 = arith.constant 0 : index
    %36 = vector.load %arg3[%c0_5, %c0_6] : memref<64x32xf32, #tpu.memory_space<vmem>>, vector<64x32xf32>
    %cst_7 = arith.constant dense<0.000000e+00> : vector<64x128xf32>
    %37 = tpu.matmul %36, %35, %cst_7 {dimension_numbers = #tpu.dot_dimension_numbers<[1], [0], [0], [1], [0, 0, 1, 1], [], []>, precision = #tpu.contract_precision<fp32>} : vector<64x32xf32>, vector<32x128xf32>, vector<64x128xf32> -> vector<64x128xf32>
    %c0_8 = arith.constant 0 : index
    %c0_9 = arith.constant 0 : index
    %38 = vector.load %arg4[%c0_8, %c0_9] : memref<64x1xf32, #tpu.memory_space<vmem>>, vector<64x1xf32>
    %39 = vector.broadcast %38 : vector<64x1xf32> to vector<64x128xf32>
    %40 = arith.addf %37, %39 : vector<64x128xf32>
    %cst_10 = arith.constant 0.000000e+00 : f32
    %41 = vector.broadcast %cst_10 : f32 to vector<64x128xf32>
    %42 = arith.maximumf %40, %41 : vector<64x128xf32>
    %c0_11 = arith.constant 0 : index
    %c0_12 = arith.constant 0 : index
    %43 = vector.load %arg5[%c0_11, %c0_12] : memref<64x1xf32, #tpu.memory_space<vmem>>, vector<64x1xf32>
    %44 = vector.broadcast %43 : vector<64x1xf32> to vector<64x128xf32>
    %45 = arith.mulf %42, %44 : vector<64x128xf32>
    %cst_13 = arith.constant dense<0.000000e+00> : vector<128xf32>
    %46 = vector.multi_reduction <add>, %45, %cst_13 [0] : vector<64x128xf32> to vector<128xf32>
    %47 = vector.shape_cast %46 : vector<128xf32> to vector<1x128xf32>
    %48 = arith.addf %47, %31 : vector<1x128xf32>
    %49 = arith.negf %48 : vector<1x128xf32>
    %50 = math.exp %49 : vector<1x128xf32>
    %cst_14 = arith.constant 1.000000e+00 : f32
    %51 = vector.broadcast %cst_14 : f32 to vector<1x128xf32>
    %52 = arith.addf %51, %50 : vector<1x128xf32>
    %53 = arith.divf %51, %52 : vector<1x128xf32>
    %c0_15 = arith.constant 0 : index
    %c0_16 = arith.constant 0 : index
    %54 = vector.load %arg6[%c0_15, %c0_16] : memref<1x128xf32, #tpu.memory_space<vmem>>, vector<1x128xf32>
    tpu.vector_store %arg6[%c0_15, %c0_16], %53 {strides = array<i32>} : memref<1x128xf32, #tpu.memory_space<vmem>>, vector<1x128xf32>,
    return
  }
  func.func @transform_0(%arg0: i32) -> (i32, i32) {
    %c0_i32 = arith.constant 0 : i32
    %c0_i32_0 = arith.constant 0 : i32
    return %c0_i32, %arg0 : i32, i32
  }
  func.func @transform_1(%arg0: i32) -> (i32, i32) {
    %c0_i32 = arith.constant 0 : i32
    %c0_i32_0 = arith.constant 0 : i32
    %c0_i32_1 = arith.constant 0 : i32
    return %c0_i32, %c0_i32_0 : i32, i32
  }
  func.func @transform_2(%arg0: i32) -> (i32, i32) {
    %c0_i32 = arith.constant 0 : i32
    %c0_i32_0 = arith.constant 0 : i32
    %c0_i32_1 = arith.constant 0 : i32
    return %c0_i32, %c0_i32_0 : i32, i32
  }
  func.func @transform_3(%arg0: i32) -> (i32, i32) {
    %c0_i32 = arith.constant 0 : i32
    %c0_i32_0 = arith.constant 0 : i32
    %c0_i32_1 = arith.constant 0 : i32
    return %c0_i32, %c0_i32_0 : i32, i32
  }
  func.func @transform_4(%arg0: i32) -> (i32, i32) {
    %c0_i32 = arith.constant 0 : i32
    %c0_i32_0 = arith.constant 0 : i32
    %c0_i32_1 = arith.constant 0 : i32
    return %c0_i32, %c0_i32_0 : i32, i32
  }
  func.func @transform_5(%arg0: i32) -> (i32, i32) {
    %c0_i32 = arith.constant 0 : i32
    %c0_i32_0 = arith.constant 0 : i32
    return %c0_i32, %arg0 : i32, i32
  }
}

</mosaic_0001>

<bundles_post_ra>
// kernel: tpu_custom_call.1
= control target key start
LH: loop header
LB: loop body
LE: loop exit
PB: predicated region body
PF: predicated region fallthrough
CT: control target
= control target key end

     0   :  { %10 = vsyncpa [#allocation3], 0  ;;  %s3862_s0 = inlined_call_operand.vmem [shape: s32[4,256], index: 0, kind: input, shape index: {}]   ;;  %s3863_s1 = inlined_call_operand.vmem [shape: f32[65,36], index: 1, kind: input, shape index: {}]   ;;  %s3864_s2 = inlined_call_operand.vmem [shape: f32[64,32], index: 2, kind: input, shape index: {}]   ;;  %s3865_s3 = inlined_call_operand.vmem [shape: f32[64,1], index: 3, kind: input, shape index: {}]   ;;  %s3866_s4 = inlined_call_operand.vmem [shape: f32[64,1], index: 4, kind: input, shape index: {}]   ;;  %s3867_s5 = inlined_call_operand.hbm [shape: f32[1,256], index: 5, kind: output, shape index: {}]  }
   0x1   :  { %12 = vsyncpa [#allocation3 + $0x1], 0  ;;  %s3122_s18 = smov 0   ;;  %s3124_s19 = smov 0  }
   0x2   :  { %s3126_s20 = smov 0   ;;  %s3128_s21 = smov 0  }
   0x3 LB: > { %s3143_s22 = sadd.s32 4294967295, %s3085_s21   ;;  %s2237_s23 = sadd.s32 4294967294, %s3085_s21   ;;  %s3085_s21 = sphi %s3128_s21, %s3873_s21   ;;  %s3081_s20 = sphi %s3126_s20, %s3872_s20   ;;  %s3077_s19 = sphi %s3124_s19, %s3871_s19   ;;  %s3073_s18 = sphi %s3122_s18, %s3870_s18  }
   0x4   : > { %s3147_s24 = sadd.s32 1, %s3085_s21   ;;  %s135_s25 = sadd.s32 1, %s3081_s20 }
   0x5   : > { %s132_s26 = ssub.s32 %s3085_s21, %s3147_s24  ;;  %p145_p0 = scmp.ne.s32.totalorder %s3081_s20, %s3077_s19 }
   0x6   : > { %p133_p1 = scmp.eq.s32.totalorder %s132_s26, 0  ;;  %p146_p2 = scmp.eq.s32.totalorder %s3143_s22, 1 }
   0x7   : > { %p151_p3 = scmp.ne.s32.totalorder %s3077_s19, %s3073_s18  ;;  %p152_p4 = scmp.eq.s32.totalorder %s2237_s23, 1 }
   0x8   : > { %s3158_s27 = scalar_select %p133_p1, %s3081_s20, %s135_s25  }
   0x9   : > { %p3160_p5 = por %p146_p2, %p145_p0  ;;  %p3164_p6 = por %p152_p4, %p151_p3 }
   0xa   : > { %p2240_p7 = scmp.ge.s32.totalorder %s3085_s21, 1  ;;  %p189_p8 = scmp.lt.s32.totalorder %s3085_s21, 3 }
   0xc   : > { %p190_p9 = pnand %p2240_p7, %p189_p8 }
   0xd   : > { %p215_p10 = scmp.lt.s32.totalorder (!%p190_p9), %s3143_s22, 1  ;;  %v220_v0 = vlaneseq (!%p190_p9)  ;;  %v322_v1 = vld [vmem:[%s3863_s1] sm:$0xff] (!%p190_p9)  ;;  %v323_v2 = vld [vmem:[%s3863_s1 + $0x8] sm:$0xff] (!%p190_p9)  ;;  %v3087_v3 = vmov (!%p190_p9), 0.0|0.0   ;;  %vm331_vm0 = vcmask (!%p190_p9), 293888   ;;  %v324_v4 = vld [vmem:[%s3863_s1 + $0x10] sm:$0xff] (!%p190_p9) }
   0xe   : > { %193 = sbr.rel (%p190_p9) target bundleno = 803 (0x323), region = 40  ;;  %2764 = vmatprep.subr.bf16.mxu1 (!%p190_p9), %v3087_v3  ;;  %2770 = vmatprep.subr.bf16.mxu0 (!%p190_p9), %v3087_v3  ;;  %vm3088_vm1 = vmmov (!%p190_p9), 0   ;;  %v3089_v6 = vmov (!%p190_p9), 0.0   ;;  %v333_v7 = vsel (!%p190_p9), %vm331_vm0, %v322_v1, 0  ;;  %v336_v8 = vsel (!%p190_p9), %vm331_vm0, %v323_v2, 0  ;;  %v325_v12 = vld [vmem:[%s3863_s1 + $0x18] sm:$0xff] (!%p190_p9) }
   0xf   : > { %v221_v5 = vshrl.u32 (!%p190_p9), %v220_v0, 7  ;;  %2432 = vmatprep.mubr.msk.f32.mxu1 (!%p190_p9), %vm3088_vm1, %v3089_v6  ;;  %2469 = vmatprep.mubr.msk.f32.mxu0 (!%p190_p9), %vm3088_vm1, %v3089_v6  ;;  %v339_v9 = vsel (!%p190_p9), %vm331_vm0, %v324_v4, 0  ;;  %v3190_v10 = vand.u32 (!%p190_p9), 4294901760, %v333_v7  ;;  %v3192_v11 = vand.u32 (!%p190_p9), 4294901760, %v336_v8  ;;  %s213_s12 = sand.u32 (!%p190_p9), 1, %s3077_s19   ;;  %s2263_s13 = sshll.u32 (!%p190_p9), %s3143_s22, 4 }
  0x10   : > { %v3197_v16 = vand.u32 (!%p190_p9), 4294901760, %v339_v9  ;;  %v3206_v23 = vsel (!%p190_p9), %vm331_vm0, %v325_v12, 0  ;;  %s3820_s23 = scalar_lea.hbm (!%p190_p9), %s3867_s5, %s2263_s13  ;;  %s2170_s25 = scalar_lea.sflag (!%p190_p9), [#allocation3], %s213_s12 }
  0x11   : > { %v228_v13 = vsub.s32 (!%p190_p9), 0, %v221_v5  ;;  %v252_v14 = vsub.s32 (!%p190_p9), 1, %v221_v5  ;;  %v276_v15 = vsub.s32 (!%p190_p9), 2, %v221_v5  ;;  %v222_v17 = vadd.s32 (!%p190_p9), 8, %v221_v5 }
  0x12   : > { %v300_v18 = vsub.s32 (!%p190_p9), 3, %v221_v5  ;;  %v223_v20 = vadd.s32 (!%p190_p9), 16, %v221_v5  ;;  %v224_v21 = vadd.s32 (!%p190_p9), 24, %v221_v5  ;;  %v3203_v22 = vsub.f32 (!%p190_p9), %v333_v7, %v3190_v10 }
  0x13   : > { %v3212_v27 = vadd.s32 (!%p190_p9), 32, %v221_v5  ;;  %v3218_v30 = vsub.f32 (!%p190_p9), %v336_v8, %v3192_v11  ;;  %v3221_v31 = vsub.f32 (!%p190_p9), %v339_v9, %v3197_v16  ;;  %v3271_v9 = vand.u32 (!%p190_p9), 4294901760, %v3206_v23 }
  0x14   : > { %v435_v29 = vand.u32 (!%p190_p9), 4294901760, %v3203_v22 }
  0x15   : > { %s216_s11 = scalar_select %p215_p10, %s3143_s22, 1 }
  0x16   : > { %s3091_s22 = smov [#allocation2]  }
  0x17   : > { %s2241_s14 = sshll.u32 %s216_s11, 2  ;;  %s3027_s30 = sshll.u32 %s3091_s22, 4  ;;  %s3028_s30 = int_to_ptr.vmem [resolvable:$false] %s3027_s30 }
  0x18   : > { %s218_s17 = scalar_lea.vmem %s3862_s0, %s2241_s14  ;;  %s214_s14 = scalar_lea.vmem [#allocation2], %s213_s12 }
  0x19   : > { %v219_v19 = vld [vmem:[%s218_s17] sm:$0xf]  ;;  %s2182_s15 = sshll.u32 %s214_s14, 4  ;;  %s3029_s6 = scalar_lea.vmem %s3028_s30, 32  ;;  %s3822_s15 = int_to_ptr.vmem [resolvable:$true] %s2182_s15 }
  0x1a   : > { %v229_v24 = vrot.slane %v219_v19, %v228_v13  ;;  %v3208_v25 = vrot.slane %v219_v19, %v252_v14  ;;  %v3210_v26 = vrot.slane %v219_v19, %v276_v15  ;;  %v3214_v28 = vrot.slane %v219_v19, %v300_v18  ;;  %s3023_s26 = scalar_lea.vmem %s3822_s15, 16  ;;  %p3030_p0 = scmp.lt.s32.totalorder %s3822_s15, %s3028_s30 }
  0x1b   : > { %v445_v15 = vand.u32 4294901760, %v3218_v30  ;;  %p3024_p11 = scmp.ne.s32.totalorder %s3822_s15, %s3023_s26  ;;  %p3031_p1 = scmp.lt.s32.totalorder %s3029_s6, %s3023_s26 }
  0x1c   : > { %vm230_vm2 = vcmp.eq.s32.totalorder %v229_v24, %v221_v5  ;;  %vm231_vm3 = vcmp.eq.s32.totalorder %v229_v24, %v222_v17  ;;  %vm254_vm4 = vcmp.eq.s32.totalorder %v3208_v25, %v221_v5  ;;  %vm255_vm5 = vcmp.eq.s32.totalorder %v3208_v25, %v222_v17 }
  0x1d   : > { %v2242_v32 = vsel %vm230_vm2, 1.0, %v3089_v6  ;;  %v2243_v33 = vsel %vm231_vm3, 1.0, %v3089_v6  ;;  %v2247_v34 = vsel %vm254_vm4, 1.0, %v3089_v6  ;;  %v2248_v35 = vsel %vm255_vm5, 1.0, %v3089_v6  ;;  %p3025_p12 = pnand %p3024_p11, %p3160_p5  ;;  %p3032_p2 = por %p3031_p1, %p3030_p0 }
  0x1e   : > { %v269_v36 = vadd.f32 %v2247_v34, %v2242_v32  ;;  %v270_v37 = vadd.f32 %v2248_v35, %v2243_v33  ;;  %vm278_vm6 = vcmp.eq.s32.totalorder %v3210_v26, %v221_v5  ;;  %vm279_vm7 = vcmp.eq.s32.totalorder %v3210_v26, %v222_v17  ;;  %v326_v32 = vld [vmem:[%s3863_s1 + $0x20] sm:$0xff] }
  0x1f   : > { %v2252_v38 = vsel %vm278_vm6, 1.0, %v3089_v6  ;;  %v2253_v39 = vsel %vm279_vm7, 1.0, %v3089_v6  ;;  %vm302_vm8 = vcmp.eq.s32.totalorder %v3214_v28, %v221_v5  ;;  %vm303_vm9 = vcmp.eq.s32.totalorder %v3214_v28, %v222_v17  ;;  %p3026_p13 = pneg %p3025_p12 }
  0x20   : > { %v293_v40 = vadd.f32 %v2252_v38, %v269_v36  ;;  %v294_v41 = vadd.f32 %v2253_v39, %v270_v37  ;;  %v2257_v42 = vsel %vm302_vm8, 1.0, %v3089_v6  ;;  %v2258_v43 = vsel %vm303_vm9, 1.0, %v3089_v6  ;;  %v327_v37 = vld [vmem:[%s3863_s1 + $0x28] sm:$0xff] }
  0x21   : > { %vm232_vm10 = vcmp.eq.s32.totalorder %v229_v24, %v223_v20  ;;  %vm233_vm11 = vcmp.eq.s32.totalorder %v229_v24, %v224_v21  ;;  %vm256_vm12 = vcmp.eq.s32.totalorder %v3208_v25, %v223_v20  ;;  %vm257_vm13 = vcmp.eq.s32.totalorder %v3208_v25, %v224_v21  ;;  %p3033_p3 = pnand %p3032_p2, %p3026_p13 }
  0x22   : > { %v317_v44 = vadd.f32 %v2257_v42, %v293_v40  ;;  %v318_v45 = vadd.f32 %v2258_v43, %v294_v41  ;;  %v2244_v46 = vsel %vm232_vm10, 1.0, %v3089_v6  ;;  %v2245_v47 = vsel %vm233_vm11, 1.0, %v3089_v6 }
  0x23   : > { %v2249_v48 = vsel %vm256_vm12, 1.0, %v3089_v6  ;;  %v2250_v49 = vsel %vm257_vm13, 1.0, %v3089_v6  ;;  %vm280_vm14 = vcmp.eq.s32.totalorder %v3210_v26, %v223_v20  ;;  %vm281_vm15 = vcmp.eq.s32.totalorder %v3210_v26, %v224_v21 }
  0x24   : > { %v364_v50 = vand.u32 4294901760, %v317_v44  ;;  %v367_v51 = vand.u32 4294901760, %v318_v45  ;;  %v271_v52 = vadd.f32 %v2249_v48, %v2244_v46  ;;  %v272_v53 = vadd.f32 %v2250_v49, %v2245_v47  ;;  %v328_v48 = vld [vmem:[%s3863_s1 + $0x30] sm:$0xff] }
  0x25   : > { %v2254_v54 = vsel %vm280_vm14, 1.0, %v3089_v6  ;;  %v2255_v55 = vsel %vm281_vm15, 1.0, %v3089_v6  ;;  %vm304_vm2 = vcmp.eq.s32.totalorder %v3214_v28, %v223_v20  ;;  %vm305_vm3 = vcmp.eq.s32.totalorder %v3214_v28, %v224_v21 }
  0x26   : > { %v3249_v56 = vpack.c.bf16 %v367_v51, %v364_v50  ;;  %v3251_v57 = vsub.f32 %v317_v44, %v364_v50  ;;  %v3253_v58 = vsub.f32 %v318_v45, %v367_v51  ;;  %v295_v59 = vadd.f32 %v2254_v54, %v271_v52 }
  0x27   : > { %v296_v60 = vadd.f32 %v2255_v55, %v272_v53  ;;  %v2259_v61 = vsel %vm304_vm2, 1.0, %v3089_v6  ;;  %v2260_v62 = vsel %vm305_vm3, 1.0, %v3089_v6  ;;  %vm234_vm4 = vcmp.eq.s32.totalorder %v229_v24, %v3212_v27 }
  0x28   : > { %2766 = vmatpush3.bf16.msra.mxu1 %v3249_v56  ;;  %v319_v63 = vadd.f32 %v2259_v61, %v295_v59  ;;  %v2246_v0 = vsel %vm234_vm4, 1.0, %v3089_v6  ;;  %vm258_vm5 = vcmp.eq.s32.totalorder %v3208_v25, %v3212_v27  ;;  %vm282_vm6 = vcmp.eq.s32.totalorder %v3210_v26, %v3212_v27 }
  0x29   : > { %2767 = vmatprep.subr.bf16.mxu1 %v3087_v3  ;;  %v320_v1 = vadd.f32 %v2260_v62, %v296_v60  ;;  %v2251_v2 = vsel %vm258_vm5, 1.0, %v3089_v6  ;;  %v2256_v4 = vsel %vm282_vm6, 1.0, %v3089_v6  ;;  %vm306_vm7 = vcmp.eq.s32.totalorder %v3214_v28, %v3212_v27  ;;  %v329_v62 = vld [vmem:[%s3863_s1 + $0x38] sm:$0xff] }
  0x2a   : > { %v370_v5 = vand.u32 4294901760, %v319_v63  ;;  %v273_v7 = vadd.f32 %v2251_v2, %v2246_v0  ;;  %v526_v8 = vand.u32 4294901760, %v3251_v57  ;;  %v2261_v13 = vsel %vm306_vm7, 1.0, %v3089_v6 }
  0x2b   : > { %v373_v12 = vand.u32 4294901760, %v320_v1  ;;  %v533_v14 = vand.u32 4294901760, %v3253_v58  ;;  %v436_v20 = vsub.f32 %v3203_v22, %v435_v29  ;;  %vm359_vm8 = vcmask 1043456  }
  0x2c   : > { %v3276_v17 = vsub.f32 %v319_v63, %v370_v5  ;;  %v297_v18 = vadd.f32 %v2256_v4, %v273_v7  ;;  %v527_v19 = vsub.f32 %v3251_v57, %v526_v8  ;;  %v455_v35 = vand.u32 4294901760, %v3221_v31 }
  0x2d   : > { %v3284_v21 = vpack.c.bf16 %v373_v12, %v370_v5  ;;  %v3286_v24 = vsub.f32 %v320_v1, %v373_v12  ;;  %v534_v25 = vsub.f32 %v3253_v58, %v533_v14  ;;  %v3300_v36 = vsub.f32 %v3206_v23, %v3271_v9 }
  0x2e   : > { %v321_v26 = vadd.f32 %v2261_v13, %v297_v18  ;;  %v528_v27 = vand.u32 4294901760, %v527_v19  ;;  %v540_v28 = vand.u32 4294901760, %v3276_v17  ;;  %v437_v39 = vand.u32 4294901760, %v436_v20  ;;  %v330_v18 = vld [vmem:[%s3863_s1 + $0x40] sm:$0x1] }
  0x2f   : > { %2769 = vmatpush3.bf16.msra.mxu1 %v3284_v21  ;;  %v535_v33 = vand.u32 4294901760, %v534_v25  ;;  %v547_v34 = vand.u32 4294901760, %v3286_v24  ;;  %v446_v41 = vsub.f32 %v3218_v30, %v445_v15  ;;  %v345_v44 = vsel %vm331_vm0, %v326_v32, 0 }
  0x30   : > { %2430 = vmatprep.subr.mxu1 %v3089_v6  ;;  %v361_v38 = vsel %vm359_vm8, %v321_v26, 0  ;;  %v541_v40 = vsub.f32 %v3276_v17, %v540_v28  ;;  %v3318_v46 = vand.u32 4294901760, %v345_v44  ;;  %v348_v47 = vsel %vm331_vm0, %v327_v37, 0 }
  0x31   : > { %v3312_v42 = vand.u32 4294901760, %v361_v38  ;;  %v2771_v23 = vpack.c.bf16 %v535_v33, %v528_v27  ;;  %v548_v43 = vsub.f32 %v3286_v24, %v547_v34  ;;  %v456_v51 = vsub.f32 %v3221_v31, %v455_v35 }
  0x32   : > { %v542_v45 = vand.u32 4294901760, %v541_v40  ;;  %v465_v52 = vand.u32 4294901760, %v3300_v36  ;;  %v447_v53 = vand.u32 4294901760, %v446_v41  ;;  %v3334_v54 = vsub.f32 %v345_v44, %v3318_v46 }
  0x33   : > { %2431 = vmatpush3.msra.mxu1 %v3312_v42  ;;  %2772 = vmatpush3.bf16.msra.mxu0 %v2771_v23  ;;  %v549_v49 = vand.u32 4294901760, %v548_v43  ;;  %v3326_v50 = vsub.f32 %v361_v38, %v3312_v42  ;;  %v3336_v55 = vand.u32 4294901760, %v348_v47  ;;  %v351_v61 = vsel %vm331_vm0, %v328_v48, 0 }
  0x34   : > { %2433 = vmatmul.mubr.f32.vlgmr.msra.gmra.mrb[0].mxu1 %v437_v39  ;;  %2773 = vmatprep.subr.bf16.mxu0 %v3087_v3  ;;  %v457_v0 = vand.u32 4294901760, %v456_v51  ;;  %v466_v1 = vsub.f32 %v3300_v36, %v465_v52  ;;  %v475_v2 = vand.u32 4294901760, %v3334_v54  ;;  %v3358_v5 = vand.u32 4294901760, %v351_v61 }
  0x35   : > { %2435 = vmatprep.mubr.msk.f32.mxu1 %vm3088_vm1, %v3089_v6  ;;  %v2774_v59 = vpack.c.bf16 %v549_v49, %v542_v45  ;;  %v554_v60 = vand.u32 4294901760, %v3326_v50  ;;  %2848 = vmatprep.subr.bf16.mxu1 %v3087_v3  ;;  %v3356_v4 = vsub.f32 %v348_v47, %v3336_v55  ;;  %v354_v7 = vsel %vm331_vm0, %v329_v62, 0 }
  0x36   : > { %2851 = vmatpush3.bf16.msra.mxu1 %v2771_v23  ;;  %v2777_v13 = vpack.c.bf16 %v3253_v58, %v3251_v57  ;;  %v3368_v19 = vand.u32 4294901760, %v354_v7  ;;  %v467_v20 = vand.u32 4294901760, %v466_v1  ;;  %v476_v25 = vsub.f32 %v3334_v54, %v475_v2 }
  0x37   : > { %2775 = vmatpush3.bf16.msra.mxu0 %v2774_v59  ;;  %v555_v63 = vsub.f32 %v3326_v50, %v554_v60  ;;  %2849 = vmatprep.subr.bf16.mxu1 %v3087_v3  ;;  %v485_v26 = vand.u32 4294901760, %v3356_v4  ;;  %v3377_v27 = vsub.f32 %v351_v61, %v3358_v5  ;;  %v357_v32 = vsel %vm331_vm0, %v330_v18, 0 }
  0x38   : > { %2436 = vmatmul.mubr.f32.gmra.mrb[2].mxu1 %v447_v53  ;;  %2467 = vmatprep.subr.mxu0 %v3089_v6  ;;  %v2780_v33 = vpack.c.bf16 %v3286_v24, %v3276_v17  ;;  %v3389_v37 = vsub.f32 %v354_v7, %v3368_v19  ;;  %v477_v38 = vand.u32 4294901760, %v476_v25  ;;  %v3396_v41 = vand.u32 4294901760, %v357_v32 }
  0x39   : > { %2438 = vmatprep.mubr.msk.f32.mxu1 %vm3088_vm1, %v3089_v6  ;;  %v556_v12 = vand.u32 4294901760, %v555_v63  ;;  %v486_v39 = vsub.f32 %v3356_v4, %v485_v26  ;;  %v495_v40 = vand.u32 4294901760, %v3377_v27  ;;  %v2789_v61 = vpack.c.bf16 %v533_v14, %v526_v8 }
  0x3a   : > { %2852 = vmatpush3.bf16.msra.mxu1 %v2774_v59  ;;  %v505_v44 = vand.u32 4294901760, %v3389_v37  ;;  %v3409_v45 = vsub.f32 %v357_v32, %v3396_v41  ;;  %v2792_v62 = vpack.c.bf16 %v547_v34, %v540_v28  ;;  %vm1273_vm0 = vcmask 261120  }
  0x3b   : > { %2468 = vmatpush3.msra.mxu0 %v556_v12  ;;  %2850 = vmatprep.subr.mxu1 %v3089_v6  ;;  %v487_v23 = vand.u32 4294901760, %v486_v39  ;;  %v496_v43 = vsub.f32 %v3377_v27, %v495_v40  ;;  %v1226_v39 = vld [vmem:[%s3865_s3 + $0x8] sm:$0xff] }
  0x3c   : > { %2439 = vmatmul.mubr.f32.gmra.mrb[4].mxu1 %v457_v0  ;;  %2470 = vmatmul.mubr.f32.vlgmr.msra.gmra.mrb[0].mxu0 %v3190_v10  ;;  %v506_v48 = vsub.f32 %v3389_v37, %v505_v44  ;;  %v515_v49 = vand.u32 4294901760, %v3409_v45 }
  0x3d   : > { %2776 = vmatprep.subr.bf16.mxu0 %v3087_v3  ;;  %2441 = vmatprep.mubr.msk.f32.mxu1 %vm3088_vm1, %v3089_v6  ;;  %v497_v47 = vand.u32 4294901760, %v496_v43 }
  0x3e   : > { %2472 = vmatprep.mubr.msk.f32.mxu0 %vm3088_vm1, %v3089_v6  ;;  %2778 = vmatpush3.bf16.msra.mxu0 %v2777_v13  ;;  %v507_v51 = vand.u32 4294901760, %v506_v48  ;;  %v516_v53 = vsub.f32 %v3409_v45, %v515_v49 }
  0x3f   : > { %2779 = vmatprep.subr.bf16.mxu0 %v3087_v3  ;;  %2853 = vmatpush3.msra.mxu1 %v556_v12 }
  0x40   : > { %2442 = vmatmul.mubr.f32.gmra.mrb[6].mxu1 %v467_v20  ;;  %2473 = vmatmul.mubr.f32.gmra.mrb[2].mxu0 %v3192_v11  ;;  %v517_v59 = vand.u32 4294901760, %v516_v53 }
  0x41   : > { %2444 = vmatprep.mubr.msk.f32.mxu1 %vm3088_vm1, %v3089_v6  ;;  %2475 = vmatprep.mubr.msk.f32.mxu0 %vm3088_vm1, %v3089_v6 }
  0x42   : > { %2781 = vmatpush3.bf16.msra.mxu0 %v2780_v33  ;;  %v3090_v33 = vmov 0  }
  0x43   : > { %2504 = vmatprep.subr.mxu0 %v3089_v6  ;;  %3017 = vset.pattern.permute.xlu0 %v3090_v33 }
  0x44   : > { %2445 = vmatmul.mubr.f32.gmra.mrb[8].mxu1 %v477_v38  ;;  %2476 = vmatmul.mubr.f32.gmra.mrb[4].mxu0 %v3197_v16 }
  0x45   : > { %2447 = vmatprep.mubr.msk.f32.mxu1 %vm3088_vm1, %v3089_v6  ;;  %2506 = vmatprep.mubr.msk.f32.mxu0 %vm3088_vm1, %v3089_v6 }
  0x46   : > { %2505 = vmatpush3.msra.mxu0 %v3326_v50  ;;  %3018 = vset.pattern.permute.xlu1 %v3090_v33 }
  0x47   : > { %2782 = vmatprep.subr.bf16.mxu0 %v3087_v3 }
  0x48   : > { %2448 = vmatmul.mubr.f32.gmra.mrb[10].mxu1 %v487_v23  ;;  %2507 = vmatmul.mubr.f32.vlgmr.msra.gmra.mrb[0].mxu0 %v3203_v22  ;;  %v1218_v23 = vld [vmem:[%s3864_s2 + $0x8] sm:$0xff] }
  0x49   : > { %2450 = vmatprep.mubr.msk.f32.mxu1 %vm3088_vm1, %v3089_v6  ;;  %2509 = vmatprep.mubr.msk.f32.mxu0 %vm3088_vm1, %v3089_v6  ;;  %v1278_v48 = vsel %vm1273_vm0, %v1218_v23, 0 }
  0x4a   : > { %2784 = vmatpush3.bf16.msra.mxu0 %v3249_v56 }
  0x4b   : > { %2785 = vmatprep.subr.bf16.mxu0 %v3087_v3 }
  0x4c   : > { %2451 = vmatmul.mubr.f32.gmra.mrb[12].mxu1 %v497_v47  ;;  %2510 = vmatmul.mubr.f32.gmra.mrb[2].mxu0 %v3218_v30  ;;  %v1217_v30 = vld [vmem:[%s3864_s2] sm:$0xff]  ;;  %v2093_v47 = vld [vmem:[%s3866_s4 + $0x8] sm:$0xff] }
  0x4d   : > { %2453 = vmatprep.mubr.msk.f32.mxu1 %vm3088_vm1, %v3089_v6  ;;  %2512 = vmatprep.mubr.msk.f32.mxu0 %vm3088_vm1, %v3089_v6 }
  0x4e   : > { %2787 = vmatpush3.bf16.msra.mxu0 %v3284_v21 }
  0x4f   : > { %2541 = vmatprep.subr.mxu0 %v3089_v6 }
  0x50   : > { %2454 = vmatmul.mubr.f32.gmra.mrb[14].mxu1 %v507_v51  ;;  %2513 = vmatmul.mubr.f32.gmra.mrb[4].mxu0 %v3221_v31 }
  0x51   : > { %2456 = vmatprep.mubr.msk.f32.mxu1 %vm3088_vm1, %v3089_v6  ;;  %2515 = vmatprep.mubr.msk.f32.mxu0 %vm3088_vm1, %v3089_v6 }
  0x52   : > { %2542 = vmatpush3.msra.mxu0 %v3312_v42 }
  0x53   : > { %2788 = vmatprep.subr.bf16.mxu0 %v3087_v3 }
  0x54   : > { %2457 = vmatmul.mubr.f32.gmra.mrb[16].mxu1 %v517_v59  ;;  %2516 = vmatmul.mubr.f32.gmra.mrb[6].mxu0 %v3300_v36 }
  0x55   : > { %2478 = vmatprep.mubr.msk.f32.mxu1 %vm3088_vm1, %v3089_v6  ;;  %2518 = vmatprep.mubr.msk.f32.mxu0 %vm3088_vm1, %v3089_v6 }
  0x58   : > { %2479 = vmatmul.mubr.f32.vlgmr.msra.gmra.mrb[6].mxu1 %v3271_v9  ;;  %2519 = vmatmul.mubr.f32.gmra.mrb[8].mxu0 %v3334_v54 }
  0x59   : > { %2481 = vmatprep.mubr.msk.f32.mxu1 %vm3088_vm1, %v3089_v6  ;;  %2521 = vmatprep.mubr.msk.f32.mxu0 %vm3088_vm1, %v3089_v6 }
  0x5c   : > { %2482 = vmatmul.mubr.f32.gmra.mrb[8].mxu1 %v3318_v46  ;;  %2522 = vmatmul.mubr.f32.gmra.mrb[10].mxu0 %v3356_v4 }
  0x5d   : > { %2484 = vmatprep.mubr.msk.f32.mxu1 %vm3088_vm1, %v3089_v6  ;;  %2524 = vmatprep.mubr.msk.f32.mxu0 %vm3088_vm1, %v3089_v6 }
  0x60   : > { %2485 = vmatmul.mubr.f32.gmra.mrb[10].mxu1 %v3336_v55  ;;  %2525 = vmatmul.mubr.f32.gmra.mrb[12].mxu0 %v3377_v27  ;;  %v1227_v27 = vld [vmem:[%s3865_s3 + $0x10] sm:$0xff] }
  0x61   : > { %2487 = vmatprep.mubr.msk.f32.mxu1 %vm3088_vm1, %v3089_v6  ;;  %2527 = vmatprep.mubr.msk.f32.mxu0 %vm3088_vm1, %v3089_v6 }
  0x62   : > { %1245 = vperm.xlu1 %3018, %v1227_v27  }
  0x64   : > { %2488 = vmatmul.mubr.f32.gmra.mrb[12].mxu1 %v3358_v5  ;;  %2528 = vmatmul.mubr.f32.gmra.mrb[14].mxu0 %v3389_v37 }
  0x65   : > { %2490 = vmatprep.mubr.msk.f32.mxu1 %vm3088_vm1, %v3089_v6  ;;  %2530 = vmatprep.mubr.msk.f32.mxu0 %vm3088_vm1, %v3089_v6 }
  0x68   : > { %2491 = vmatmul.mubr.f32.gmra.mrb[14].mxu1 %v3368_v19  ;;  %2531 = vmatmul.mubr.f32.gmra.mrb[16].mxu0 %v3409_v45  ;;  %v2092_v45 = vld [vmem:[%s3866_s4] sm:$0xff] }
  0x69   : > { %2493 = vmatprep.mubr.msk.f32.mxu1 %vm3088_vm1, %v3089_v6  ;;  %2543 = vmatprep.mubr.msk.f32.mxu0 %vm3088_vm1, %v3089_v6 }
  0x6c   : > { %2494 = vmatmul.mubr.f32.gmra.mrb[18].mxu1 %v3396_v41  ;;  %2544 = vmatmul.mubr.f32.vlgmr.msra.gmra.mrb[0].mxu0 %v435_v29 }
  0x6d   : > { %2546 = vmatprep.mubr.msk.f32.mxu0 %vm3088_vm1, %v3089_v6  ;;  %2790 = vmatpush3.bf16.msra.mxu0 %v2789_v61  ;;  %v3628_v61 = vand.u32 4294901760, %v1278_v48 }
  0x6e   : > { %2791 = vmatprep.subr.bf16.mxu0 %v3087_v3 }
  0x70   : > { %2547 = vmatmul.mubr.f32.gmra.mrb[2].mxu0 %v445_v15 }
  0x71   : > { %2549 = vmatprep.mubr.msk.f32.mxu0 %vm3088_vm1, %v3089_v6  ;;  %2793 = vmatpush3.bf16.msra.mxu0 %v2792_v62  ;;  %v1219_v62 = vld [vmem:[%s3864_s2 + $0x10] sm:$0xff] }
  0x72   : > { %2578 = vmatprep.subr.mxu0 %v3089_v6 }
  0x74   : > { %2550 = vmatmul.mubr.f32.gmra.mrb[4].mxu0 %v455_v35 }
  0x75   : > { %2552 = vmatprep.mubr.msk.f32.mxu0 %vm3088_vm1, %v3089_v6  ;;  %2579 = vmatpush3.msra.mxu0 %v554_v60 }
  0x76   : > { %2794 = vmatprep.subr.bf16.mxu0 %v3087_v3 }
  0x78   : > { %2553 = vmatmul.mubr.f32.gmra.mrb[6].mxu0 %v465_v52 }
  0x79   : > { %2555 = vmatprep.mubr.msk.f32.mxu0 %vm3088_vm1, %v3089_v6 }
  0x7c   : > { %2556 = vmatmul.mubr.f32.gmra.mrb[8].mxu0 %v475_v2 }
  0x7d   : > { %2558 = vmatprep.mubr.msk.f32.mxu0 %vm3088_vm1, %v3089_v6 }
  0x80   : > { %2559 = vmatmul.mubr.f32.gmra.mrb[10].mxu0 %v485_v26  ;;  %v1225_v26 = vld [vmem:[%s3865_s3] sm:$0xff] }
  0x81   : > { %2561 = vmatprep.mubr.msk.f32.mxu0 %vm3088_vm1, %v3089_v6  ;;  %1235 = vperm.xlu0 %3017, %v1225_v26  }
  0x84   : > { %2562 = vmatmul.mubr.f32.gmra.mrb[12].mxu0 %v495_v40  ;;  %v1228_v40 = vld [vmem:[%s3865_s3 + $0x18] sm:$0xff] }
  0x85   : > { %2564 = vmatprep.mubr.msk.f32.mxu0 %vm3088_vm1, %v3089_v6  ;;  %1240 = vperm.xlu0 %3017, %v1226_v39  }
  0x86   : > { %1250 = vperm.xlu1 %3018, %v1228_v40  }
  0x88   : > { %2565 = vmatmul.mubr.f32.gmra.mrb[14].mxu0 %v505_v44 }
  0x89   : > { %2567 = vmatprep.mubr.msk.f32.mxu0 %vm3088_vm1, %v3089_v6  ;;  %2102 = vperm.xlu0 %3017, %v2092_v45   ;;  %v1232_v45 = vld [vmem:[%s3865_s3 + $0x38] sm:$0xff] }
  0x8a   : > { %2107 = vperm.xlu1 %3018, %v2093_v47   ;;  %v2097_v47 = vld [vmem:[%s3866_s4 + $0x28] sm:$0xff] }
  0x8c   : > { %2568 = vmatmul.mubr.f32.gmra.mrb[18].mxu0 %v515_v49 }
  0x8d   : > { %2580 = vmatprep.mubr.msk.f32.mxu0 %vm3088_vm1, %v3089_v6 }
  0x90   : > { %2581 = vmatmul.mubr.f32.vlgmr.msra.gmra.mrb[0].mxu0 %v3190_v10 }
  0x91   : > { %2583 = vmatprep.mubr.msk.f32.mxu0 %vm3088_vm1, %v3089_v6  ;;  %2796 = vmatpush3.bf16.msra.mxu0 %v3249_v56  ;;  %v1275_v56 = vsel %vm1273_vm0, %v1217_v30, 0 }
  0x92   : > { %2797 = vmatprep.subr.bf16.mxu0 %v3087_v3  ;;  %v3591_v58 = vand.u32 4294901760, %v1275_v56 }
  0x94   : > { %2584 = vmatmul.mubr.f32.gmra.mrb[2].mxu0 %v3192_v11 }
  0x95   : > { %2586 = vmatprep.mubr.msk.f32.mxu0 %vm3088_vm1, %v3089_v6  ;;  %2799 = vmatpush3.bf16.msra.mxu0 %v3284_v21 }
  0x96   : > { %2615 = vmatprep.subr.mxu0 %v3089_v6 }
  0x98   : > { %2587 = vmatmul.mubr.f32.gmra.mrb[4].mxu0 %v3197_v16 }
  0x99   : > { %2589 = vmatprep.mubr.msk.f32.mxu0 %vm3088_vm1, %v3089_v6  ;;  %2616 = vmatpush3.msra.mxu0 %v3312_v42 }
  0x9c   : > { %2590 = vmatmul.mubr.f32.gmra.mrb[6].mxu0 %v3271_v9 }
  0x9d   : > { %2592 = vmatprep.mubr.msk.f32.mxu0 %vm3088_vm1, %v3089_v6 }
  0xa0   : > { %2593 = vmatmul.mubr.f32.gmra.mrb[8].mxu0 %v3318_v46 }
  0xa1   : > { %2595 = vmatprep.mubr.msk.f32.mxu0 %vm3088_vm1, %v3089_v6 }
  0xa4   : > { %2596 = vmatmul.mubr.f32.gmra.mrb[10].mxu0 %v3336_v55 }
  0xa5   : > { %2598 = vmatprep.mubr.msk.f32.mxu0 %vm3088_vm1, %v3089_v6 }
  0xa8   : > { %2599 = vmatmul.mubr.f32.gmra.mrb[12].mxu0 %v3358_v5 }
  0xa9   : > { %2601 = vmatprep.mubr.msk.f32.mxu0 %vm3088_vm1, %v3089_v6 }
  0xac   : > { %2602 = vmatmul.mubr.f32.gmra.mrb[14].mxu0 %v3368_v19 }
  0xad   : > { %2604 = vmatprep.mubr.msk.f32.mxu0 %vm3088_vm1, %v3089_v6 }
  0xb0   : > { %2605 = vmatmul.mubr.f32.gmra.mrb[20].mxu0 %v3396_v41 }
  0xb1   : > { %2617 = vmatprep.mubr.msk.f32.mxu0 %vm3088_vm1, %v3089_v6 }
  0xb4   : > { %2618 = vmatmul.mubr.f32.vlgmr.msra.gmra.mrb[0].mxu0 %v3190_v10 }
  0xb5   : > { %2620 = vmatprep.mubr.msk.f32.mxu0 %vm3088_vm1, %v3089_v6 }
  0xb8   : > { %2621 = vmatmul.mubr.f32.gmra.mrb[2].mxu0 %v3192_v11 }
  0xb9   : > { %2623 = vmatprep.mubr.msk.f32.mxu0 %vm3088_vm1, %v3089_v6 }
  0xbc   : > { %2624 = vmatmul.mubr.f32.gmra.mrb[4].mxu0 %v3197_v16 }
  0xbd   : > { %2626 = vmatprep.mubr.msk.f32.mxu0 %vm3088_vm1, %v3089_v6 }
  0xc0   : > { %2627 = vmatmul.mubr.f32.gmra.mrb[6].mxu0 %v3271_v9 }
  0xc1   : > { %2629 = vmatprep.mubr.msk.f32.mxu0 %vm3088_vm1, %v3089_v6 }
  0xc4   : > { %2630 = vmatmul.mubr.f32.gmra.mrb[8].mxu0 %v3318_v46 }
  0xc5   : > { %2632 = vmatprep.mubr.msk.f32.mxu0 %vm3088_vm1, %v3089_v6 }
  0xc8   : > { %2633 = vmatmul.mubr.f32.gmra.mrb[10].mxu0 %v3336_v55 }
  0xc9   : > { %2635 = vmatprep.mubr.msk.f32.mxu0 %vm3088_vm1, %v3089_v6 }
  0xcc   : > { %2636 = vmatmul.mubr.f32.gmra.mrb[12].mxu0 %v3358_v5 }
  0xcd   : > { %2638 = vmatprep.mubr.msk.f32.mxu0 %vm3088_vm1, %v3089_v6 }
  0xd0   : > { %2639 = vmatmul.mubr.f32.gmra.mrb[14].mxu0 %v3368_v19 }
  0xd1   : > { %2641 = vmatprep.mubr.msk.f32.mxu0 %vm3088_vm1, %v3089_v6  ;;  %v3594_v6 = vsub.f32 %v1275_v56, %v3591_v58 }
  0xd3   : > { %v1369_v14 = vand.u32 4294901760, %v3594_v6 }
  0xd4   : > { %2642 = vmatmul.mubr.f32.gmra.mrb[22].mxu0 %v3396_v41 }
  0xd5   : > { %v1370_v15 = vsub.f32 %v3594_v6, %v1369_v14 }
  0xd7   : > { %v1371_v24 = vand.u32 4294901760, %v1370_v15  ;;  %v1230_v15 = vld [vmem:[%s3865_s3 + $0x28] sm:$0xff] }
  0xd9   : > { %2652 = vmatprep.mubr.f32.mxu1 %v1371_v24 }
 0x107   : > { %v439_v3 = vpop.f32.mrb[0].mxu1 }
 0x108   : > { %v2434_v10 = vpop.f32.mrb[1].mxu1 }
 0x109   : > { %v2094_v10 = vld [vmem:[%s3866_s4 + $0x10] sm:$0xff] }
 0x10a   : > { %2112 = vperm.xlu1 %3018, %v2094_v10  }
 0x10b   : > { %v449_v11 = vpop.f32.mrb[2].mxu1 }
 0x10c   : > { %v2437_v16 = vpop.f32.mrb[3].mxu1 }
 0x10f   : > { %v459_v22 = vpop.f32.mrb[4].mxu1 }
 0x110   : > { %v2440_v29 = vpop.f32.mrb[5].mxu1 }
 0x127   : > { %v519_v31 = vpop.f32.mrb[16].mxu1 }
 0x128   : > { %v2458_v57 = vpop.f32.mrb[17].mxu1 }
 0x129   : > { %v1281_v57 = vsel %vm1273_vm0, %v1219_v62, 0 }
 0x12b   : > { %v633_v8 = vpop.f32.mrb[6].mxu1 }
 0x12c   : > { %v2480_v9 = vpop.f32.mrb[7].mxu1 }
 0x12d   : > { %v3647_v9 = vsub.f32 %v1278_v48, %v3628_v61 }
 0x12f   : > { %v639_v17 = vpop.f32.mrb[8].mxu1 }
 0x130   : > { %v2483_v21 = vpop.f32.mrb[9].mxu1 }
 0x133   : > { %v645_v28 = vpop.f32.mrb[10].mxu1 }
 0x134   : > { %v2486_v34 = vpop.f32.mrb[11].mxu1 }
 0x137   : > { %v3600_v35 = vpop.f32.mrb[12].mxu1 }
 0x138   : > { %v2489_v36 = vpop.f32.mrb[13].mxu1 }
 0x139   : > { %v3656_v36 = vand.u32 4294901760, %v1281_v57 }
 0x13b   : > { %v801_v42 = vpop.f32.mrb[16].mxu0  ;;  %v3602_v46 = vpop.f32.mrb[14].mxu1  ;;  %v3680_v26 = vsub.f32 %v1281_v57, %v3656_v36 }
 0x13c   : > { %v2532_v50 = vpop.f32.mrb[17].mxu0  ;;  %v2492_v52 = vpop.f32.mrb[15].mxu1 }
 0x13d   : > { %v1222_v50 = vld [vmem:[%s3864_s2 + $0x28] sm:$0xff]  ;;  %v1389_v62 = vand.u32 4294901760, %v3680_v26 }
 0x13f   : > { %v663_v54 = vpop.f32.mrb[18].mxu1 }
 0x140   : > { %v664_v55 = vadd.f32 %v663_v54, %v519_v31  ;;  %v2495_v60 = vpop.f32.mrb[19].mxu1 }
 0x142   : > { %v802_v63 = vadd.f32 %v801_v42, %v664_v55 }
 0x15f   : > { %v943_v0 = vpop.f32.mrb[18].mxu0 }
 0x160   : > { %v944_v1 = vadd.f32 %v943_v0, %v802_v63  ;;  %v2569_v2 = vpop.f32.mrb[19].mxu0  ;;  %v1223_v0 = vld [vmem:[%s3864_s2 + $0x30] sm:$0xff] }
 0x183   : > { %v1077_v4 = vpop.f32.mrb[20].mxu0 }
 0x184   : > { %v3604_v5 = vadd.f32 %v1077_v4, %v944_v1  ;;  %v2606_v7 = vpop.f32.mrb[21].mxu0  ;;  %v1379_v1 = vand.u32 4294901760, %v3647_v9  ;;  %v1231_v4 = vld [vmem:[%s3865_s3 + $0x30] sm:$0xff] }
 0x185   : > { %v2096_v7 = vld [vmem:[%s3866_s4 + $0x20] sm:$0xff] }
 0x187   : > { %v1153_v12 = vpop.f32.mrb[0].mxu0 }
 0x188   : > { %v2854_v13 = vadd.f32 %v1153_v12, %v439_v3  ;;  %v2619_v18 = vpop.f32.mrb[1].mxu0  ;;  %v1229_v3 = vld [vmem:[%s3865_s3 + $0x20] sm:$0xff] }
 0x189   : > { %1255 = vperm.xlu0 %3017, %v1229_v3   ;;  %v1290_v18 = vsel %vm1273_vm0, %v1222_v50, 0 }
 0x18a   : > { %v1205_v51 = vmul.f32 %v2854_v13, %v2854_v13 }
 0x18b   : > { %v1159_v19 = vpop.f32.mrb[2].mxu0 }
 0x18c   : > { %v2855_v20 = vadd.f32 %v1159_v19, %v449_v11  ;;  %v2622_v25 = vpop.f32.mrb[3].mxu0  ;;  %v1224_v19 = vld [vmem:[%s3864_s2 + $0x38] sm:$0xff] }
 0x18d   : > { %1260 = vperm.xlu0 %3017, %v1230_v15   ;;  %v2098_v15 = vld [vmem:[%s3866_s4 + $0x30] sm:$0xff] }
 0x18e   : > { %v1206_v29 = vmul.f32 %v2855_v20, %v2855_v20 }
 0x18f   : > { %v1165_v32 = vpop.f32.mrb[4].mxu0 }
 0x190   : > { %v2856_v37 = vadd.f32 %v1165_v32, %v459_v22  ;;  %v2625_v38 = vpop.f32.mrb[5].mxu0  ;;  %v1220_v22 = vld [vmem:[%s3864_s2 + $0x18] sm:$0xff]  ;;  %v1293_v32 = vsel %vm1273_vm0, %v1223_v0, 0 }
 0x191   : > { %1265 = vperm.xlu0 %3017, %v1231_v4   ;;  %v3711_v10 = vand.u32 4294901760, %v1293_v32 }
 0x192   : > { %v1207_v52 = vmul.f32 %v2856_v37, %v2856_v37 }
 0x193   : > { %v1171_v41 = vpop.f32.mrb[6].mxu0  ;;  %v3735_v50 = vsub.f32 %v1293_v32, %v3711_v10 }
 0x194   : > { %v2857_v43 = vadd.f32 %v1171_v41, %v633_v8  ;;  %v2628_v44 = vpop.f32.mrb[7].mxu0  ;;  %v1221_v8 = vld [vmem:[%s3864_s2 + $0x20] sm:$0xff] }
 0x195   : > { %v1287_v42 = vsel %vm1273_vm0, %v1221_v8, 0  ;;  %v1296_v44 = vsel %vm1273_vm0, %v1224_v19, 0  ;;  %1270 = vperm.xlu0 %3017, %v1232_v45   ;;  %v1429_v19 = vand.u32 4294901760, %v3735_v50 }
 0x196   : > { %v1208_v20 = vmul.f32 %v2857_v43, %v2857_v43  ;;  %v3682_v27 = vand.u32 4294901760, %v1287_v42  ;;  %v3691_v43 = vand.u32 4294901760, %v1290_v18  ;;  %v3720_v57 = vand.u32 4294901760, %v1296_v44 }
 0x197   : > { %v1177_v49 = vpop.f32.mrb[8].mxu0 }
 0x198   : > { %v2858_v53 = vadd.f32 %v1177_v49, %v639_v17  ;;  %v2631_v59 = vpop.f32.mrb[9].mxu0  ;;  %v2095_v17 = vld [vmem:[%s3866_s4 + $0x18] sm:$0xff]  ;;  %v3709_v3 = vsub.f32 %v1287_v42, %v3682_v27 }
 0x199   : > { %2117 = vperm.xlu1 %3018, %v2095_v17   ;;  %v1380_v59 = vsub.f32 %v3647_v9, %v1379_v1  ;;  %2132 = vperm.xlu0 %3017, %v2098_v15  }
 0x19a   : > { %v1209_v11 = vsub.f32 %v1205_v51, %v2858_v53  ;;  %v1409_v42 = vand.u32 4294901760, %v3709_v3 }
 0x19b   : > { %v1183_v16 = vpop.f32.mrb[10].mxu0 }
 0x19c   : > { %v1213_v30 = vmul.f32 0.5, %v1209_v11  ;;  %v2859_v31 = vadd.f32 %v1183_v16, %v645_v28  ;;  %v2634_v56 = vpop.f32.mrb[11].mxu0  ;;  %v1284_v28 = vsel %vm1273_vm0, %v1220_v22, 0 }
 0x19d   : > { %v3667_v2 = vand.u32 4294901760, %v1284_v28  ;;  %2122 = vperm.xlu1 %3018, %v2096_v7   ;;  %v3718_v56 = vsub.f32 %v1290_v18, %v3691_v43  ;;  %v1410_v18 = vsub.f32 %v3709_v3, %v1409_v42 }
 0x19e   : > { %v1299_v21 = vand.u32 4294901760, %v1213_v30  ;;  %v1210_v24 = vsub.f32 %v1206_v29, %v2859_v31 }
 0x19f   : > { %v1189_v34 = vpop.f32.mrb[12].mxu0  ;;  %v3689_v23 = vsub.f32 %v1284_v28, %v3667_v2  ;;  %v2099_v28 = vld [vmem:[%s3866_s4 + $0x38] sm:$0xff]  ;;  %v1419_v0 = vand.u32 4294901760, %v3718_v56 }
 0x1a0   : > { %v1449_v54 = vsub.f32 %v1213_v30, %v1299_v21  ;;  %v1214_v55 = vmul.f32 0.5, %v1210_v24  ;;  %v2860_v60 = vadd.f32 %v1189_v34, %v3600_v35  ;;  %v2637_v63 = vpop.f32.mrb[13].mxu0  ;;  %v1390_v34 = vsub.f32 %v3680_v26, %v1389_v62 }
 0x1a1   : > { %2127 = vperm.xlu1 %3018, %v2097_v47   ;;  %v1399_v31 = vand.u32 4294901760, %v3689_v23 }
 0x1a2   : > { %v1302_v35 = vand.u32 4294901760, %v1214_v55  ;;  %v1211_v12 = vsub.f32 %v1207_v52, %v2860_v60  ;;  %v1450_v13 = vand.u32 4294901760, %v1449_v54  ;;  %v1381_v60 = vand.u32 4294901760, %v1380_v59 }
 0x1a3   : > { %v1195_v25 = vpop.f32.mrb[14].mxu0  ;;  %v1400_v63 = vsub.f32 %v3689_v23, %v1399_v31 }
 0x1a4   : > { %v3685_v33 = vpack.c.bf16 %v1302_v35, %v1299_v21  ;;  %v1456_v37 = vsub.f32 %v1214_v55, %v1302_v35  ;;  %v1215_v38 = vmul.f32 0.5, %v1211_v12  ;;  %v2861_v39 = vadd.f32 %v1195_v25, %v3602_v46  ;;  %v2640_v40 = vpop.f32.mrb[15].mxu0 }
 0x1a5   : > { %v1451_v41 = vsub.f32 %v1449_v54, %v1450_v13  ;;  %2137 = vperm.xlu1 %3018, %v2099_v28   ;;  %v3745_v35 = vsub.f32 %v1296_v44, %v3720_v57  ;;  %v1401_v32 = vand.u32 4294901760, %v1400_v63  ;;  %v1430_v44 = vsub.f32 %v3735_v50, %v1429_v19 }
 0x1a6   : > { %v1305_v46 = vand.u32 4294901760, %v1215_v38  ;;  %v1212_v48 = vsub.f32 %v1208_v20, %v2861_v39  ;;  %2801 = vmatprep.subr.bf16.mxu1 %v3685_v33  ;;  %v1457_v49 = vand.u32 4294901760, %v1456_v37  ;;  %v3701_v51 = vpack.c.bf16 %v1456_v37, %v1449_v54 }
 0x1a7   : > { %v1201_v53 = vpop.f32.mrb[22].mxu0  ;;  %2803 = vmatpush3.bf16.msra.mxu1 %v3685_v33  ;;  %v1420_v39 = vsub.f32 %v3718_v56, %v1419_v0  ;;  %v1439_v40 = vand.u32 4294901760, %v3745_v35 }
 0x1a8   : > { %v1463_v11 = vsub.f32 %v1215_v38, %v1305_v46  ;;  %v1216_v16 = vmul.f32 0.5, %v1212_v48  ;;  %v3714_v22 = vadd.f32 %v1201_v53, %v3604_v5  ;;  %v1458_v29 = vsub.f32 %v1456_v37, %v1457_v49  ;;  %v2643_v30 = vpop.f32.mrb[23].mxu0 }
 0x1a9   : > { %v3722_v8 = vpack.c.bf16 %v1457_v49, %v1450_v13  ;;  %v1452_v5 = vand.u32 4294901760, %v1451_v41  ;;  %v1391_v13 = vand.u32 4294901760, %v1390_v34  ;;  %v1411_v41 = vand.u32 4294901760, %v1410_v18 }
 0x1aa   : > { %v1308_v17 = vand.u32 4294901760, %v1216_v16  ;;  %v1459_v21 = vand.u32 4294901760, %v1458_v29  ;;  %v1464_v24 = vand.u32 4294901760, %v1463_v11  ;;  %v1421_v47 = vand.u32 4294901760, %v1420_v39 }
 0x1ab   : > { %v1431_v48 = vand.u32 4294901760, %v1430_v44 }
 0x1ac   : > { %v3737_v52 = vpack.c.bf16 %v1308_v17, %v1305_v46  ;;  %v1470_v54 = vsub.f32 %v1216_v16, %v1308_v17  ;;  %v2808_v55 = vpack.c.bf16 %v1459_v21, %v1452_v5  ;;  %v1465_v4 = vsub.f32 %v1463_v11, %v1464_v24 }
 0x1ad   : > { %v1440_v46 = vsub.f32 %v3745_v35, %v1439_v40 }
 0x1ae   : > { %2805 = vmatprep.subr.bf16.mxu1 %v3737_v52  ;;  %v1471_v7 = vand.u32 4294901760, %v1470_v54  ;;  %v2820_v12 = vpack.c.bf16 %v1470_v54, %v1463_v11  ;;  %v1466_v37 = vand.u32 4294901760, %v1465_v4 }
 0x1af   : > { %2807 = vmatpush3.bf16.msra.mxu1 %v3737_v52  ;;  %v1441_v49 = vand.u32 4294901760, %v1440_v46 }
 0x1b0   : > { %2809 = vmatprep.subr.bf16.mxu1 %v2808_v55  ;;  %v1472_v20 = vsub.f32 %v1470_v54, %v1471_v7  ;;  %v2836_v25 = vpack.c.bf16 %v1471_v7, %v1464_v24 }
 0x1b2   : > { %2653 = vmatmul.mubr.f32.vlgmr.msra.gmra.mrb[20].mxu1 %v1381_v60  ;;  %v1473_v38 = vand.u32 4294901760, %v1472_v20 }
 0x1b3   : > { %2811 = vmatpush3.bf16.msra.mxu1 %v2808_v55  ;;  %2655 = vmatprep.mubr.f32.mxu1 %v1391_v13 }
 0x1b4   : > { %v2812_v45 = vpack.c.bf16 %v1473_v38, %v1466_v37 }
 0x1b6   : > { %2656 = vmatmul.mubr.f32.gmra.mrb[22].mxu1 %v1401_v32  ;;  %2813 = vmatprep.subr.bf16.mxu1 %v2812_v45 }
 0x1b7   : > { %2815 = vmatpush3.bf16.msra.mxu1 %v2812_v45  ;;  %2658 = vmatprep.mubr.f32.mxu1 %v1411_v41 }
 0x1b8   : > { %2817 = vmatprep.subr.bf16.mxu1 %v3701_v51 }
 0x1ba   : > { %2659 = vmatmul.mubr.f32.gmra.mrb[24].mxu1 %v1421_v47 }
 0x1bb   : > { %2661 = vmatprep.mubr.f32.mxu1 %v1431_v48 }
 0x1be   : > { %2662 = vmatmul.mubr.f32.gmra.mrb[26].mxu1 %v1441_v49 }
 0x1bf   : > { %2672 = vmatprep.mubr.f32.mxu1 %v3591_v58 }
 0x1c2   : > { %2673 = vmatmul.mubr.f32.vlgmr.msra.gmra.mrb[20].mxu1 %v3628_v61 }
 0x1c3   : > { %2819 = vmatpush3.bf16.msra.mxu1 %v3701_v51  ;;  %2675 = vmatprep.mubr.f32.mxu1 %v3656_v36 }
 0x1c4   : > { %2821 = vmatprep.subr.bf16.mxu1 %v2820_v12 }
 0x1c6   : > { %2676 = vmatmul.mubr.f32.gmra.mrb[22].mxu1 %v3667_v2 }
 0x1c7   : > { %2823 = vmatpush3.bf16.msra.mxu1 %v2820_v12  ;;  %2678 = vmatprep.mubr.f32.mxu1 %v3682_v27 }
 0x1c8   : > { %2825 = vmatprep.subr.bf16.mxu1 %v3685_v33 }
 0x1ca   : > { %2679 = vmatmul.mubr.f32.gmra.mrb[24].mxu1 %v3691_v43 }
 0x1cb   : > { %2681 = vmatprep.mubr.f32.mxu1 %v3711_v10 }
 0x1ce   : > { %2682 = vmatmul.mubr.f32.gmra.mrb[26].mxu1 %v3720_v57 }
 0x1cf   : > { %2692 = vmatprep.mubr.f32.mxu1 %v3594_v6  ;;  %v1236_v6 = vpop.permute.xlu0 %1235 }
 0x1d2   : > { %2693 = vmatmul.mubr.f32.vlgmr.msra.gmra.mrb[20].mxu1 %v3647_v9 }
 0x1d3   : > { %2827 = vmatpush3.bf16.msra.mxu1 %v3685_v33  ;;  %2695 = vmatprep.mubr.f32.mxu1 %v3680_v26  ;;  %v1241_v9 = vpop.permute.xlu0 %1240 }
 0x1d4   : > { %2829 = vmatprep.subr.bf16.mxu1 %v3737_v52 }
 0x1d6   : > { %2696 = vmatmul.mubr.f32.gmra.mrb[22].mxu1 %v3689_v23 }
 0x1d7   : > { %2831 = vmatpush3.bf16.msra.mxu1 %v3737_v52  ;;  %2698 = vmatprep.mubr.f32.mxu1 %v3709_v3  ;;  %v2103_v26 = vpop.permute.xlu0 %2102 }
 0x1d8   : > { %2833 = vmatprep.subr.bf16.mxu1 %v3722_v8 }
 0x1da   : > { %2699 = vmatmul.mubr.f32.gmra.mrb[24].mxu1 %v3718_v56 }
 0x1db   : > { %2701 = vmatprep.mubr.f32.mxu1 %v3735_v50 }
 0x1de   : > { %2702 = vmatmul.mubr.f32.gmra.mrb[26].mxu1 %v3745_v35 }
 0x1df   : > { %2712 = vmatprep.mubr.f32.mxu1 %v1369_v14  ;;  %v1246_v14 = vpop.permute.xlu1 %1245 }
 0x1e2   : > { %2713 = vmatmul.mubr.f32.vlgmr.msra.gmra.mrb[20].mxu1 %v1379_v1 }
 0x1e3   : > { %2835 = vmatpush3.bf16.msra.mxu1 %v3722_v8  ;;  %2715 = vmatprep.mubr.f32.mxu1 %v1389_v62  ;;  %v1251_v1 = vpop.permute.xlu1 %1250 }
 0x1e4   : > { %2837 = vmatprep.subr.bf16.mxu1 %v2836_v25 }
 0x1e6   : > { %2716 = vmatmul.mubr.f32.gmra.mrb[22].mxu1 %v1399_v31 }
 0x1e7   : > { %2839 = vmatpush3.bf16.msra.mxu1 %v2836_v25  ;;  %2718 = vmatprep.mubr.f32.mxu1 %v1409_v42 }
 0x1e8   : > { %2841 = vmatprep.subr.bf16.mxu1 %v3685_v33 }
 0x1ea   : > { %2719 = vmatmul.mubr.f32.gmra.mrb[24].mxu1 %v1419_v0 }
 0x1eb   : > { %2721 = vmatprep.mubr.f32.mxu1 %v1429_v19 }
 0x1ee   : > { %2722 = vmatmul.mubr.f32.gmra.mrb[26].mxu1 %v1439_v40 }
 0x1ef   : > { %2732 = vmatprep.mubr.f32.mxu1 %v3591_v58 }
 0x1f2   : > { %2733 = vmatmul.mubr.f32.vlgmr.msra.gmra.mrb[20].mxu1 %v3628_v61 }
 0x1f3   : > { %2843 = vmatpush3.bf16.msra.mxu1 %v3685_v33  ;;  %2735 = vmatprep.mubr.f32.mxu1 %v3656_v36 }
 0x1f4   : > { %2845 = vmatprep.subr.bf16.mxu1 %v3737_v52 }
 0x1f6   : > { %2736 = vmatmul.mubr.f32.gmra.mrb[22].mxu1 %v3667_v2 }
 0x1f7   : > { %2847 = vmatpush3.bf16.msra.mxu1 %v3737_v52  ;;  %2738 = vmatprep.mubr.f32.mxu1 %v3682_v27 }
 0x1fa   : > { %2739 = vmatmul.mubr.f32.gmra.mrb[24].mxu1 %v3691_v43 }
 0x1fb   : > { %2741 = vmatprep.mubr.f32.mxu1 %v3711_v10 }
 0x1fe   : > { %2742 = vmatmul.mubr.f32.gmra.mrb[26].mxu1 %v3720_v57 }
 0x1ff   : > { %2752 = vmatprep.mubr.f32.mxu1 %v3591_v58  ;;  %v2108_v58 = vpop.permute.xlu1 %2107 }
 0x202   : > { %2753 = vmatmul.mubr.f32.vlgmr.msra.gmra.mrb[20].mxu1 %v3628_v61 }
 0x203   : > { %2755 = vmatprep.mubr.f32.mxu1 %v3656_v36  ;;  %v2113_v61 = vpop.permute.xlu1 %2112 }
 0x206   : > { %2756 = vmatmul.mubr.f32.gmra.mrb[22].mxu1 %v3667_v2 }
 0x207   : > { %2758 = vmatprep.mubr.f32.mxu1 %v3682_v27 }
 0x208   : > { %v1256_v33 = vpop.permute.xlu0 %1255 }
 0x20a   : > { %2759 = vmatmul.mubr.f32.gmra.mrb[24].mxu1 %v3691_v43 }
 0x20b   : > { %2761 = vmatprep.mubr.f32.mxu1 %v3711_v10 }
 0x20c   : > { %v1261_v23 = vpop.permute.xlu0 %1260 }
 0x20e   : > { %2762 = vmatmul.mubr.f32.gmra.mrb[26].mxu1 %v3720_v57 }
 0x210   : > { %v1266_v3 = vpop.permute.xlu0 %1265 }
 0x214   : > { %v1271_v28 = vpop.permute.xlu0 %1270 }
 0x218   : > { %v2118_v51 = vpop.permute.xlu1 %2117  ;;  %v2133_v19 = vpop.permute.xlu0 %2132 }
 0x21c   : > { %v2123_v31 = vpop.permute.xlu1 %2122 }
 0x220   : > { %v2128_v55 = vpop.permute.xlu1 %2127 }
 0x224   : > { %v2138_v32 = vpop.permute.xlu1 %2137 }
 0x2d5   : > { %v2754_v36 = vpop.f32.mrb[20].mxu1 }
 0x2d6   : > { %v2862_v2 = vadd.f32 %v2754_v36, %v1241_v9  ;;  %v2038_v53 = vpop.f32.mrb[21].mxu1 }
 0x2d7   : > { %v2863_v27 = vadd.f32 %v2038_v53, %v1236_v6 }
 0x2d8   : > { %v2085_v59 = vmax.f32 %v2862_v2, 0.0 }
 0x2d9   : > { %v2084_v43 = vmax.f32 %v2863_v27, 0.0  ;;  %v2757_v62 = vpop.f32.mrb[22].mxu1 }
 0x2da   : > { %v2141_v10 = vmul.f32 %v2108_v58, %v2085_v59  ;;  %v2864_v11 = vadd.f32 %v2757_v62, %v1251_v1  ;;  %v2050_v16 = vpop.f32.mrb[23].mxu1 }
 0x2db   : > { %v2140_v29 = vmul.f32 %v2103_v26, %v2084_v43  ;;  %v2865_v30 = vadd.f32 %v2050_v16, %v1246_v14 }
 0x2dc   : > { %v2087_v57 = vmax.f32 %v2864_v11, 0.0 }
 0x2dd   : > { %v2148_v56 = vadd.f32 %v2141_v10, %v2140_v29  ;;  %v2086_v8 = vmax.f32 %v2865_v30, 0.0  ;;  %v2760_v15 = vpop.f32.mrb[24].mxu1 }
 0x2de   : > { %v2866_v17 = vadd.f32 %v2760_v15, %v1261_v23  ;;  %v2062_v5 = vpop.f32.mrb[25].mxu1  ;;  %v2143_v34 = vmul.f32 %v2118_v51, %v2087_v57 }
 0x2df   : > { %v2142_v21 = vmul.f32 %v2113_v61, %v2086_v8  ;;  %v2867_v24 = vadd.f32 %v2062_v5, %v1256_v33 }
 0x2e0   : > { %v2089_v50 = vmax.f32 %v2866_v17, 0.0 }
 0x2e1   : > { %v2149_v42 = vadd.f32 %v2148_v56, %v2142_v21  ;;  %v2088_v52 = vmax.f32 %v2867_v24, 0.0  ;;  %v2763_v54 = vpop.f32.mrb[26].mxu1 }
 0x2e2   : > { %v2868_v60 = vadd.f32 %v2763_v54, %v1271_v28  ;;  %v2074_v63 = vpop.f32.mrb[27].mxu1  ;;  %v2145_v35 = vmul.f32 %v2128_v55, %v2089_v50 }
 0x2e3   : > { %v2144_v0 = vmul.f32 %v2123_v31, %v2088_v52  ;;  %v2150_v4 = vadd.f32 %v2149_v42, %v2143_v34  ;;  %v2869_v7 = vadd.f32 %v2074_v63, %v1266_v3 }
 0x2e4   : > { %v2091_v13 = vmax.f32 %v2868_v60, 0.0 }
 0x2e5   : > { %v2151_v12 = vadd.f32 %v2150_v4, %v2144_v0  ;;  %v2090_v18 = vmax.f32 %v2869_v7, 0.0 }
 0x2e6   : > { %v2147_v37 = vmul.f32 %v2138_v32, %v2091_v13 }
 0x2e7   : > { %v2146_v20 = vmul.f32 %v2133_v19, %v2090_v18  ;;  %v2152_v25 = vadd.f32 %v2151_v12, %v2145_v35 }
 0x2e9   : > { %v2153_v38 = vadd.f32 %v2152_v25, %v2146_v20 }
 0x2eb   : > { %v2154_v39 = vadd.f32 %v2153_v38, %v2147_v37 }
 0x2ed   : > { %v2155_v40 = vrot.slane %v2154_v39, 4 }
 0x2ef   : > { %v2156_v41 = vadd.f32 %v2155_v40, %v2154_v39 }
 0x2f1   : > { %v2157_v44 = vrot.slane %v2156_v41, 2 }
 0x2f3   : > { %v2158_v45 = vadd.f32 %v2157_v44, %v2156_v41 }
 0x2f5   : > { %v2159_v47 = vrot.slane %v2158_v45, 1 }
 0x2f7   : > { %v2160_v46 = vadd.f32 %v2159_v47, %v2158_v45 }
 0x2f9   : > { %v2161_v48 = vadd.f32 %v2160_v46, %v3714_v22 }
 0x2fb   : > { %v2262_v49 = vmul.f32 -1.442695, %v2161_v48 }
 0x2fd   : > { %3019 = vpow2.f32 %v2262_v49 }
 0x307   : > { %v3020_v6 = vpop.eup %3019 }
 0x308   : > { %v2165_v14 = vadd.f32 1.0, %v3020_v6 }
 0x30a   : > { %3021 = vrcp.f32 %v2165_v14 }
 0x314   : > { %v3022_v22 = vpop.eup %3021 }
 0x315   : > { %2168 = vst [vmem:[%s214_s14] sm:$0x1] %v3022_v22 }
 0x316   : > { %3036 = shalt.err (!%p3033_p3)
}
 0x317   : > { %s3037_s7 = scalar_lea.hbm %s3820_s23, 16  ;;  %s3041_s10 = scalar_lea.hbm %s3867_s5, 32 }
 0x318   : > { %p3038_p4 = scmp.ne.s32.totalorder %s3820_s23, %s3037_s7  ;;  %p3042_p9 = scmp.lt.u32.totalorder %s3820_s23, %s3867_s5 }
 0x319   : > { %p3043_p10 = scmp.lt.u32.totalorder %s3041_s10, %s3037_s7  ;;  %p3045_p12 = scmp.lt.u32.totalorder %s3037_s7, %s3820_s23 }
 0x31a   : > { %p3039_p7 = pnand %p3038_p4, %p3160_p5 }
 0x31b   : > { %p3044_p11 = por %p3043_p10, %p3042_p9 }
 0x31c   : > { %p3040_p8 = pneg %p3039_p7 }
 0x31d   : > { %p3046_p13 = por %p3045_p12, %p3044_p11 }
 0x31f   : > { %p3047_p0 = pnand %p3046_p13, %p3040_p8 }
 0x321   : > { %3050 = shalt.err (!%p3047_p0)
}
 0x322   : > { %2974 = dma.vmem_to_hbm [thread:$0]  (%p3160_p5), %s3822_s15, 16, %s3820_s23, %s2170_s25  }
 0x323 PF: > { %p2980_p1 = scmp.ge.s32.totalorder %s3085_s21, 2  ;;  %s2194_s13 = sand.u32 1, %s3073_s18  }
 0x324   : > { %s2195_s14 = scalar_lea.sflag [#allocation3], %s2194_s13 }
 0x325   : > { %p2977_p2 = pnand %p2980_p1, %p3164_p6 }
 0x327   : > { %3068 = dma.done.wait (!%p2977_p2), %s2195_s14, 16  }
 0x328   : > { %3070 = vsyncadd (!%p2977_p2), %s2195_s14, 4294967280  ;;  %p15_p3 = scmp.ge.s32.totalorder %s3147_s24, 4   ;;  %s3870_s18 = smov %s3077_s19 }
 0x329   : > { %s3871_s19 = smov %s3081_s20  ;;  %s3872_s20 = smov %s3158_s27 }
 0x32a   : > { %s3873_s21 = smov %s3147_s24  ;;  %17 = sbr.rel (!%p15_p3) target bundleno = 3 (0x3), region = 75 }
 0x331   :  { %2199 = vsyncpa [#allocation3], 1 }
 0x332   :  { %2201 = vsyncpa [#allocation3 + $0x1], 1 }

</bundles_post_ra>
